<compile_context>
chip_gen: v7x
topology: tpu7x:2x2x1
jax: 0.10.0
libtpu: 0.0.40
codegen_flags: <defaults>
</compile_context>

<pallas_src>
import functools
import math

import jax
import jax.numpy as jnp
from jax.experimental import pallas as pl
from jax.experimental.pallas import tpu as pltpu


def _pos_encoding_kernel(table_ref, out_ref, *, w):
    """Hot path: out[r, c] = sin(((w-1) - r) * inv_dim_t[c] + phase[c]).

    table_ref: [2, C_pad]  row 0 = inv_dim_t (scale folded in), row 1 = phase
    out_ref:   [row_tile, C_pad]
    """
    row_tile, c_pad = out_ref.shape
    row0 = pl.program_id(0) * row_tile                       # scalar, int32
    row_idx = jax.lax.broadcasted_iota(jnp.int32, (row_tile, c_pad), 0) + row0
    # x_embed = linspace(w-1, -w+1, 2w-1)  ==  (w-1) - row_index  (unit step)
    xe = jnp.float32(w - 1) - row_idx.astype(jnp.float32)    # [row_tile, C_pad]

    inv_dim_t = table_ref[0:1, :]                            # [1, C_pad]
    phase = table_ref[1:2, :]                                # [1, C_pad]

    # cos(x) == sin(x + pi/2): one EUP sin per element, no select.
    out_ref[...] = jnp.sin(xe * inv_dim_t + phase)


def position_encoding_sine_1d_relative(
    x,
    num_pos_feats: int = 64,
    temperature: float = 10000.0,
    normalize: bool = False,
    scale=None,
):
    """JAX/Pallas equivalent of PositionEncodingSine1DRelative.forward.

    x: [N, C, H, W] (NCHW).  Returns pos: [2*W - 1, num_pos_feats] float32.
    """
    if scale is not None and normalize is False:
        raise ValueError("normalize should be True if scale is passed")
    if scale is None:
        scale = 2 * math.pi
    if num_pos_feats % 2 != 0:
        # PyTorch's stack(...).flatten(1) requires an even feature count; odd C
        # would silently change semantics here.
        raise ValueError("num_pos_feats must be even")

    # TODO(synk): sampled_cols / sampled_rows rescaling branch of the PyTorch
    # NestedTensor input is not implemented (assumed None).
    _, _, _, w = x.shape
    L = 2 * w - 1
    C = num_pos_feats

    # Lane-dense output: pad feature dim up to a multiple of 128.
    C_pad = max(128, pl.cdiv(C, 128) * 128)

    # Row tiling: big tiles (multiple of 8 sublanes) for throughput at large W;
    # a single tile for small W.
    ROW_TILE_MAX = 512
    L8 = ((L + 7) // 8) * 8
    row_tile = min(ROW_TILE_MAX, L8)
    num_tiles = pl.cdiv(L, row_tile)
    L_total = num_tiles * row_tile

    # Host-side setup (tiny, done once): inv_dim_t with optional scale folded
    # in, plus the alternating {0, pi/2} phase row. Padded columns are zero ->
    # sin(0) = 0, harmless, sliced away below.
    dim_idx = jnp.arange(C, dtype=jnp.float32)
    dim_t = jnp.float32(temperature) ** (2.0 * jnp.floor(dim_idx / 2.0) / C)
    inv_dim_t = 1.0 / dim_t
    if normalize:
        inv_dim_t = inv_dim_t * jnp.float32(scale)
    phase = jnp.where(jnp.arange(C) % 2 == 1,
                      jnp.float32(math.pi / 2.0), jnp.float32(0.0))

    inv_pad = jnp.zeros((C_pad,), jnp.float32).at[:C].set(inv_dim_t)
    phase_pad = jnp.zeros((C_pad,), jnp.float32).at[:C].set(phase)
    table = jnp.stack([inv_pad, phase_pad], axis=0)          # [2, C_pad]

    out = pl.pallas_call(
        functools.partial(_pos_encoding_kernel, w=w),
        out_shape=jax.ShapeDtypeStruct((L_total, C_pad), jnp.float32),
        grid=(num_tiles,),
        in_specs=[pl.BlockSpec((2, C_pad), lambda i: (0, 0))],
        out_specs=pl.BlockSpec((row_tile, C_pad), lambda i: (i, 0)),
        compiler_params=pltpu.CompilerParams(
            dimension_semantics=("parallel",)),
    )(table)

    return out[:L, :C]


def _reference(x, num_pos_feats=64, temperature=10000.0, normalize=False, scale=None):
    """Pure-JAX reference mirroring the PyTorch code, for correctness check."""
    if scale is None:
        scale = 2 * math.pi
    _, _, _, w = x.shape
    L = 2 * w - 1
    x_embed = jnp.linspace(w - 1, -w + 1, L, dtype=jnp.float32)
    if normalize:
        x_embed = x_embed * scale
    dim_t = jnp.arange(num_pos_feats, dtype=jnp.float32)
    dim_t = temperature ** (2.0 * jnp.floor(dim_t / 2.0) / num_pos_feats)
    pos_x = x_embed[:, None] / dim_t[None, :]
    pos = jnp.stack((jnp.sin(pos_x[:, 0::2]), jnp.cos(pos_x[:, 1::2])), axis=2)
    return pos.reshape(L, num_pos_feats)


if __name__ == "__main__":
    key = jax.random.PRNGKey(0)
    # Small NCHW input consistent with the module's forward (only W is used).
    x = jax.random.normal(key, (2, 4, 16, 16), dtype=jnp.float32)

    # Default config (normalize=False).
    pos = position_encoding_sine_1d_relative(
        x, num_pos_feats=64, temperature=10000.0, normalize=False)
    pos = jax.block_until_ready(pos)
    ref = _reference(x, num_pos_feats=64, temperature=10000.0, normalize=False)
    assert pos.shape == (2 * 16 - 1, 64), pos.shape
    assert jnp.allclose(pos, ref, atol=1e-5, rtol=1e-5), "mismatch (normalize=False)"

    # Normalized config (scale folded into inv_dim_t in the kernel path).
    pos_n = position_encoding_sine_1d_relative(
        x, num_pos_feats=64, temperature=10000.0, normalize=True)
    pos_n = jax.block_until_ready(pos_n)
    ref_n = _reference(x, num_pos_feats=64, temperature=10000.0, normalize=True)
    assert jnp.allclose(pos_n, ref_n, atol=1e-4, rtol=1e-4), "mismatch (normalize=True)"

    print("KERNEL_OK")
</pallas_src>

<mosaic_0001>
module attributes {stable_mosaic.version = 11 : i64} {
  func.func @_pos_encoding_kernel(%arg0: i32, %arg1: memref<2x128xf32, #tpu.memory_space<vmem>>, %arg2: memref<32x128xf32, #tpu.memory_space<vmem>>) attributes {dimension_semantics = [#tpu.dimension_semantics<parallel>], iteration_bounds = array<i64: 1>, scalar_prefetch = 0 : i64, scratch_operands = 0 : i64, tpu.core_type = #tpu.core_type<tc>, window_params = [{pipeline_mode = #tpu.pipeline_mode<synchronous>, transform_indices = @transform_0, window_bounds = array<i64: 2, 128>}, {transform_indices = @transform_1, window_bounds = array<i64: 32, 128>}]} {
    %c32_i32 = arith.constant 32 : i32
    %0 = arith.muli %arg0, %c32_i32 : i32
    %1 = tpu.iota {dimensions = array<i32: 0>} : vector<32x128xi32>
    %2 = vector.broadcast %0 : i32 to vector<32x128xi32>
    %3 = arith.addi %1, %2 : vector<32x128xi32>
    %4 = arith.sitofp %3 : vector<32x128xi32> to vector<32x128xf32>
    %cst = arith.constant 1.500000e+01 : f32
    %5 = vector.broadcast %cst : f32 to vector<32x128xf32>
    %6 = arith.subf %5, %4 : vector<32x128xf32>
    %c0 = arith.constant 0 : index
    %c0_0 = arith.constant 0 : index
    %7 = vector.load %arg1[%c0, %c0_0] : memref<2x128xf32, #tpu.memory_space<vmem>>, vector<1x128xf32>
    %c1 = arith.constant 1 : index
    %c0_1 = arith.constant 0 : index
    %8 = vector.load %arg1[%c1, %c0_1] : memref<2x128xf32, #tpu.memory_space<vmem>>, vector<1x128xf32>
    %9 = vector.broadcast %7 : vector<1x128xf32> to vector<32x128xf32>
    %10 = arith.mulf %6, %9 : vector<32x128xf32>
    %11 = vector.broadcast %8 : vector<1x128xf32> to vector<32x128xf32>
    %12 = arith.addf %10, %11 : vector<32x128xf32>
    %13 = math.sin %12 : vector<32x128xf32>
    %c0_2 = arith.constant 0 : index
    %c0_3 = arith.constant 0 : index
    %14 = vector.load %arg2[%c0_2, %c0_3] : memref<32x128xf32, #tpu.memory_space<vmem>>, vector<32x128xf32>
    tpu.vector_store %arg2[%c0_2, %c0_3], %13 {strides = array<i32>} : memref<32x128xf32, #tpu.memory_space<vmem>>, vector<32x128xf32>,
    return
  }
  func.func @transform_0(%arg0: i32) -> (i32, i32) {
    %c0_i32 = arith.constant 0 : i32
    %c0_i32_0 = arith.constant 0 : i32
    %c0_i32_1 = arith.constant 0 : i32
    return %c0_i32, %c0_i32_0 : i32, i32
  }
  func.func @transform_1(%arg0: i32) -> (i32, i32) {
    %c0_i32 = arith.constant 0 : i32
    %c0_i32_0 = arith.constant 0 : i32
    return %arg0, %c0_i32 : i32, i32
  }
}

</mosaic_0001>

<bundles_post_ra>
// kernel: tpu_custom_call.1
= control target key start
LH: loop header
LB: loop body
LE: loop exit
PB: predicated region body
PF: predicated region fallthrough
CT: control target
= control target key end

     0   :  { %6 = vsyncpa [#allocation3], 0  ;;  %s933_s0 = inlined_call_operand.hbm [shape: f32[2,128], index: 0, kind: input, shape index: {}]   ;;  %s934_s1 = inlined_call_operand.hbm [shape: f32[32,128], index: 1, kind: output, shape index: {}]  }
   0x1   :  { %7 = vsyncpa [#allocation4], 0  ;;  %s603_s6 = smov [#allocation2]   ;;  %s555_s10 = scalar_lea.hbm %s933_s0, 32 }
   0x2   :  { %s14_s7 = sshll.u32 %s603_s6, 4  ;;  %p556_p0 = scmp.ne.s32.totalorder %s933_s0, %s555_s10  ;;  %s15_s7 = int_to_ptr.vmem [resolvable:$true] %s14_s7 }
   0x3   :  { %p559_p1 = scmp.lt.u32.totalorder %s555_s10, %s933_s0 }
   0x5   :  { %p561_p2 = pnand %p559_p1, %p556_p0 }
   0x7   :  { %564 = shalt.err (!%p561_p2)
}
   0x8   :  { %s565_s15 = scalar_lea.vmem %s15_s7, 32  ;;  %p570_p4 = scmp.lt.s32.totalorder %s15_s7, %s15_s7 }
   0x9   :  { %p566_p3 = scmp.ne.s32.totalorder %s15_s7, %s565_s15  ;;  %p571_p5 = scmp.lt.s32.totalorder %s565_s15, %s565_s15 }
   0xb   :  { %p572_p6 = por %p571_p5, %p570_p4 }
   0xd   :  { %p573_p7 = pnand %p572_p6, %p566_p3 }
   0xf   :  { %576 = shalt.err (!%p573_p7)
}
  0x10   :  { %17 = dma.hbm_to_vmem [thread:$0]  %s933_s0, 32, %s15_s7, [#allocation3]  }
  0x11   :  { %599 = dma.done.wait [#allocation3], 32  }
  0x12   :  { %600 = vsyncadd [#allocation3], 4294967264  ;;  %v22_v0 = vlaneseq  ;;  %v495_v8 = vld [vmem:[#allocation2] ss:$0 sm:$0xff]  ;;  %v635_v9 = vld [vmem:[#allocation2 + $0x1] ss:$0 sm:$0xff] }
  0x13   :  { %v604_v47 = vmov 683565275   ;;  %v605_v49 = vmov 2475754826   ;;  %v606_v51 = vmov 2131351028  }
  0x14   :  { %v23_v1 = vshrl.u32 %v22_v0, 7  ;;  %v607_v53 = vmov 2102212464   ;;  %v608_v55 = vmov 920167782   ;;  %s610_s0 = smov [#allocation5]  }
  0x15   :  { %v609_v63 = vmov 1326507024   ;;  %s483_s18 = sshll.u32 %s610_s0, 4  ;;  %s484_s18 = int_to_ptr.vmem [resolvable:$true] %s483_s18 }
  0x16   :  { %v24_v2 = vadd.s32 8, %v23_v1  ;;  %v25_v3 = vadd.s32 16, %v23_v1  ;;  %v32_v4 = vcvt.s32.f32 %v23_v1  ;;  %v26_v16 = vadd.s32 24, %v23_v1  ;;  %s577_s19 = scalar_lea.vmem %s484_s18, 512  ;;  %p582_p9 = scmp.lt.s32.totalorder %s484_s18, %s484_s18 }
  0x17   :  { %p578_p8 = scmp.ne.s32.totalorder %s484_s18, %s577_s19  ;;  %p583_p10 = scmp.lt.s32.totalorder %s577_s19, %s577_s19 }
  0x18   :  { %v33_v5 = vcvt.s32.f32 %v24_v2  ;;  %v34_v6 = vcvt.s32.f32 %v25_v3  ;;  %v36_v7 = vsub.f32 15.0, %v32_v4  ;;  %v35_v22 = vcvt.s32.f32 %v26_v16 }
  0x19   :  { %p584_p11 = por %p583_p10, %p582_p9 }
  0x1a   :  { %v37_v10 = vsub.f32 15.0, %v33_v5  ;;  %v38_v11 = vsub.f32 15.0, %v34_v6  ;;  %v46_v12 = vmul.f32 %v495_v8, %v36_v7  ;;  %v39_v30 = vsub.f32 15.0, %v35_v22 }
  0x1b   :  { %p585_p12 = pnand %p584_p11, %p578_p8 }
  0x1c   :  { %v47_v13 = vmul.f32 %v495_v8, %v37_v10  ;;  %v48_v14 = vmul.f32 %v495_v8, %v38_v11  ;;  %v638_v15 = vadd.f32 %v635_v9, %v46_v12  ;;  %v655_v39 = vmul.f32 %v495_v8, %v39_v30 }
  0x1e   :  { %v641_v17 = vadd.f32 %v635_v9, %v47_v13  ;;  %v58_v18 = vand.u32 2147483647, %v638_v15  ;;  %v645_v19 = vadd.f32 %v635_v9, %v48_v14  ;;  %v61_v20 = vand.u32 2139095040, %v638_v15 }
  0x1f   :  { %vm60_vm13 = vcmp.lt.s32.totalorder %v638_v15, 0 }
  0x20   :  { %v162_v21 = vand.u32 2147483647, %v641_v17  ;;  %v62_v23 = vshrl.u32 %v61_v20, 23  ;;  %v165_v24 = vand.u32 2139095040, %v641_v17  ;;  %v65_v25 = vand.u32 8388607, %v58_v18 }
  0x21   :  { %v269_v29 = vand.u32 2139095040, %v645_v19  ;;  %v266_v44 = vand.u32 2147483647, %v645_v19  ;;  %vm768_vm15 = vcmp.le.f32.partialorder %v58_v18, 0.7853982 }
  0x22   :  { %v169_v26 = vand.u32 8388607, %v162_v21  ;;  %v497_v27 = vadd.s32 4294967169, %v62_v23  ;;  %v166_v28 = vshrl.u32 %v165_v24, 23  ;;  %v66_v34 = vor.u32 8388608, %v65_v25 }
  0x23   :  { %v270_v33 = vshrl.u32 %v269_v29, 23 }
  0x24   :  { %v68_v31 = vadd.s32 1, %v497_v27  ;;  %v501_v32 = vadd.s32 4294967169, %v166_v28  ;;  %v170_v35 = vor.u32 8388608, %v169_v26  ;;  %v657_v42 = vshll.u32 %v66_v34, 8 }
  0x25   :  { %v505_v37 = vadd.s32 4294967169, %v270_v33 }
  0x26   :  { %vm69_vm0 = vcmp.gt.s32.totalorder %v68_v31, 0  ;;  %v172_v36 = vadd.s32 1, %v501_v32  ;;  %v659_v43 = vshll.u32 %v170_v35, 8 }
  0x27   :  { %v70_v38 = vsel %vm69_vm0, %v68_v31, 0  ;;  %v662_v45 = vadd.s32 1, %v505_v37 }
  0x28   :  { %v71_v40 = vshrl.u32 %v70_v38, 5  ;;  %v72_v41 = vand.u32 31, %v70_v38  ;;  %vm173_vm1 = vcmp.gt.s32.totalorder %v172_v36, 0 }
  0x29   :  { %v174_v57 = vsel %vm173_vm1, %v172_v36, 0  ;;  %vm277_vm8 = vcmp.gt.s32.totalorder %v662_v45, 0 }
  0x2a   :  { %v73_v46 = vsub.s32 32, %v72_v41  ;;  %v75_v48 = vshll.u32 %v604_v47, %v72_v41  ;;  %v78_v50 = vshll.u32 %v605_v49, %v72_v41  ;;  %v81_v52 = vshll.u32 %v606_v51, %v72_v41 }
  0x2b   :  { %v84_v54 = vshll.u32 %v607_v53, %v72_v41  ;;  %v87_v56 = vshll.u32 %v608_v55, %v72_v41  ;;  %vm90_vm2 = vcmp.lt.s32.totalorder %v71_v40, 1  ;;  %vm91_vm3 = vcmp.lt.s32.totalorder %v71_v40, 2 }
  0x2c   :  { %v74_v58 = vshrl.u32 %v604_v47, %v73_v46  ;;  %v76_v59 = vshrl.u32 %v605_v49, %v73_v46  ;;  %v79_v60 = vshrl.u32 %v606_v51, %v73_v46  ;;  %v82_v61 = vshrl.u32 %v607_v53, %v73_v46 }
  0x2d   :  { %v85_v62 = vshrl.u32 %v608_v55, %v73_v46  ;;  %v88_v0 = vshrl.u32 %v609_v63, %v73_v46  ;;  %vm92_vm4 = vcmp.lt.s32.totalorder %v71_v40, 3  ;;  %vm93_vm5 = vcmp.lt.s32.totalorder %v71_v40, 4 }
  0x2e   :  { %v77_v1 = vor.u32 %v76_v59, %v75_v48  ;;  %v80_v2 = vor.u32 %v79_v60, %v78_v50  ;;  %v83_v3 = vor.u32 %v82_v61, %v81_v52  ;;  %v175_v6 = vshrl.u32 %v174_v57, 5 }
  0x2f   :  { %v86_v4 = vor.u32 %v85_v62, %v84_v54  ;;  %v89_v5 = vor.u32 %v88_v0, %v87_v56  ;;  %v176_v7 = vand.u32 31, %v174_v57 }
  0x30   :  { %v94_v8 = vsel %vm90_vm2, %v74_v58, %v77_v1  ;;  %v95_v10 = vsel %vm93_vm5, %v83_v3, 2102212464  ;;  %v98_v11 = vsel %vm90_vm2, %v77_v1, %v80_v2  ;;  %v102_v12 = vsel %vm90_vm2, %v80_v2, %v83_v3 }
  0x31   :  { %v96_v13 = vsel %vm92_vm4, %v80_v2, %v95_v10  ;;  %v99_v14 = vsel %vm93_vm5, %v86_v4, 920167782  ;;  %v103_v16 = vsel %vm93_vm5, %v89_v5, 1326507024  ;;  %v177_v20 = vsub.s32 32, %v176_v7 }
  0x32   :  { %v97_v22 = vsel %vm91_vm3, %v94_v8, %v96_v13  ;;  %v100_v23 = vsel %vm92_vm4, %v83_v3, %v99_v14  ;;  %v104_v24 = vsel %vm92_vm4, %v86_v4, %v103_v16  ;;  %v179_v25 = vshll.u32 %v604_v47, %v176_v7 }
  0x33   :  { %v101_v26 = vsel %vm91_vm3, %v98_v11, %v100_v23  ;;  %v105_v27 = vsel %vm91_vm3, %v102_v12, %v104_v24  ;;  %v113_v28 = vmul.u32 %v657_v42, %v97_v22  ;;  %v178_v29 = vshrl.u32 %v604_v47, %v177_v20 }
  0x34   :  { %v689_v30 = vmul.u32.u64.low %v657_v42, %v105_v27  ;;  %v690_v31 = vmul.u32.u64.high %v657_v42, %v105_v27, %v689_v30  ;;  %v693_v32 = vmul.u32.u64.low %v657_v42, %v101_v26  ;;  %v694_v33 = vmul.u32.u64.high %v657_v42, %v101_v26, %v693_v32 }
  0x35   :  { %v180_v34 = vshrl.u32 %v605_v49, %v177_v20  ;;  %v182_v35 = vshll.u32 %v605_v49, %v176_v7  ;;  %v183_v36 = vshrl.u32 %v606_v51, %v177_v20  ;;  %v185_v37 = vshll.u32 %v606_v51, %v176_v7 }
  0x36   :  { %v186_v38 = vshrl.u32 %v607_v53, %v177_v20  ;;  %v188_v40 = vshll.u32 %v607_v53, %v176_v7  ;;  %v189_v41 = vshrl.u32 %v608_v55, %v177_v20  ;;  %v191_v46 = vshll.u32 %v608_v55, %v176_v7 }
  0x37   :  { %v181_v48 = vor.u32 %v180_v34, %v179_v25  ;;  %v184_v42 = vor.u32 %v183_v36, %v182_v35  ;;  %v192_v50 = vshrl.u32 %v609_v63, %v177_v20  ;;  %vm194_vm6 = vcmp.lt.s32.totalorder %v175_v6, 1 }
  0x38   :  { %vm115_vm7 = vc.u32 %v690_v31, %v693_v32  ;;  %v116_v52 = vadd.s32 1, %v694_v33  ;;  %v187_v54 = vor.u32 %v186_v38, %v185_v37  ;;  %v190_v56 = vor.u32 %v189_v41, %v188_v40 }
  0x39   :  { %v193_v57 = vor.u32 %v192_v50, %v191_v46  ;;  %vm195_vm9 = vcmp.lt.s32.totalorder %v175_v6, 2  ;;  %vm196_vm10 = vcmp.lt.s32.totalorder %v175_v6, 3  ;;  %vm197_vm11 = vcmp.lt.s32.totalorder %v175_v6, 4 }
  0x3a   :  { %v117_v58 = vsel %vm115_vm7, %v116_v52, %v694_v33  ;;  %v198_v59 = vsel %vm194_vm6, %v178_v29, %v181_v48  ;;  %v202_v60 = vsel %vm194_vm6, %v181_v48, %v184_v42  ;;  %v199_v62 = vsel %vm197_vm11, %v187_v54, 2102212464 }
  0x3b   :  { %v118_v61 = vadd.s32 %v117_v58, %v113_v28  ;;  %v203_v0 = vsel %vm197_vm11, %v190_v56, 920167782  ;;  %v206_v1 = vsel %vm194_vm6, %v184_v42, %v187_v54  ;;  %v716_v2 = vadd.f32 %v635_v9, %v655_v39 }
  0x3c   :  { %v200_v3 = vsel %vm196_vm10, %v184_v42, %v199_v62  ;;  %v204_v4 = vsel %vm196_vm10, %v187_v54, %v203_v0  ;;  %v207_v5 = vsel %vm197_vm11, %v193_v57, 1326507024  ;;  %v278_v11 = vsel %vm277_vm8, %v662_v45, 0 }
  0x3d   :  { %v119_v7 = vadd.s32 536870912, %v118_v61  ;;  %v205_v8 = vsel %vm195_vm9, %v202_v60, %v204_v4  ;;  %v208_v10 = vsel %vm196_vm10, %v190_v56, %v207_v5  ;;  %v201_v12 = vsel %vm195_vm9, %v198_v59, %v200_v3 }
  0x3e   :  { %v209_v13 = vsel %vm195_vm9, %v206_v1, %v208_v10  ;;  %v725_v14 = vmul.u32.u64.low %v659_v43, %v205_v8  ;;  %v726_v16 = vmul.u32.u64.high %v659_v43, %v205_v8, %v725_v14  ;;  %v273_v22 = vand.u32 8388607, %v266_v44 }
  0x3f   :  { %v729_v9 = vshrl.u32 %v119_v7, 30  ;;  %v732_v39 = vmul.u32.u64.low %v659_v43, %v209_v13  ;;  %v733_v20 = vmul.u32.u64.high %v659_v43, %v209_v13, %v732_v39  ;;  %v280_v23 = vand.u32 31, %v278_v11 }
  0x40   :  { %v373_v45 = vand.u32 2139095040, %v716_v2  ;;  %v217_v24 = vmul.u32 %v659_v43, %v201_v12  ;;  %v220_v25 = vadd.s32 1, %v726_v16  ;;  %v274_v28 = vor.u32 8388608, %v273_v22 }
  0x41   :  { %v121_v6 = vshll.u32 %v729_v9, 30  ;;  %v281_v26 = vsub.s32 32, %v280_v23  ;;  %vm219_vm12 = vc.u32 %v733_v20, %v725_v14  ;;  %v283_v30 = vshll.u32 %v604_v47, %v280_v23 }
  0x42   :  { %v221_v29 = vsel %vm219_vm12, %v220_v25, %v726_v16  ;;  %v286_v33 = vshll.u32 %v605_v49, %v280_v23  ;;  %v374_v34 = vshrl.u32 %v373_v45, 23  ;;  %v279_v38 = vshrl.u32 %v278_v11, 5 }
  0x43   :  { %v741_v27 = vsub.s32 %v118_v61, %v121_v6  ;;  %v222_v36 = vadd.s32 %v221_v29, %v217_v24  ;;  %v284_v43 = vshrl.u32 %v605_v49, %v281_v26  ;;  %v287_v37 = vshrl.u32 %v606_v51, %v281_v26 }
  0x44   :  { %v289_v40 = vshll.u32 %v606_v51, %v280_v23  ;;  %v290_v41 = vshrl.u32 %v607_v53, %v281_v26  ;;  %v292_v46 = vshll.u32 %v607_v53, %v280_v23  ;;  %v756_v50 = vshll.u32 %v274_v28, 8 }
  0x45   :  { %v124_v35 = vsub.s32 0, %v741_v27  ;;  %v223_v42 = vadd.s32 536870912, %v222_v36  ;;  %v370_v52 = vand.u32 2147483647, %v716_v2  ;;  %v293_v54 = vshrl.u32 %v608_v55, %v281_v26 }
  0x46   :  { %v295_v56 = vshll.u32 %v608_v55, %v280_v23  ;;  %v296_v57 = vshrl.u32 %v609_v63, %v281_v26  ;;  %v509_v58 = vadd.s32 4294967169, %v374_v34  ;;  %v114_v59 = vadd.s32 %v693_v32, %v690_v31 }
  0x47   :  { %v498_v48 = vmin.u32 %v124_v35, %v741_v27  ;;  %v285_v61 = vor.u32 %v284_v43, %v283_v30  ;;  %v288_v62 = vor.u32 %v287_v37, %v286_v33  ;;  %v764_v0 = vshrl.u32 %v223_v42, 30 }
  0x48   :  { %v291_v1 = vor.u32 %v290_v41, %v289_v40  ;;  %v294_v3 = vor.u32 %v293_v54, %v292_v46  ;;  %vm298_vm14 = vcmp.lt.s32.totalorder %v279_v38, 1  ;;  %v144_v7 = vsub.s32 4, %v729_v9 }
  0x49   :  { %v126_v60 = vclz %v498_v48  ;;  %vm300_vm0 = vcmp.lt.s32.totalorder %v279_v38, 3  ;;  %vm301_vm1 = vcmp.lt.s32.totalorder %v279_v38, 4  ;;  %v225_v31 = vshll.u32 %v764_v0, 30 }
  0x4a   :  { %v282_v32 = vshrl.u32 %v604_v47, %v281_v26  ;;  %v297_v8 = vor.u32 %v296_v57, %v295_v56  ;;  %v307_v10 = vsel %vm301_vm1, %v294_v3, 920167782  ;;  %vm299_vm3 = vcmp.lt.s32.totalorder %v279_v38, 2 }
  0x4b   :  { %v499_v5 = vadd.s32 4294967294, %v126_v60  ;;  %v306_v11 = vsel %vm298_vm14, %v285_v61, %v288_v62  ;;  %v380_v18 = vadd.s32 1, %v509_v58  ;;  %v777_v13 = vsub.s32 %v222_v36, %v225_v31 }
  0x4c   :  { %v303_v16 = vsel %vm301_vm1, %v291_v1, 2102212464  ;;  %v308_v39 = vsel %vm300_vm0, %v291_v1, %v307_v10  ;;  %v310_v6 = vsel %vm298_vm14, %v288_v62, %v291_v1  ;;  %v145_v24 = vsel %vm60_vm13, %v144_v7, %v729_v9 }
  0x4d   :  { %vm500_vm2 = vcmp.lt.s32.totalorder %v499_v5, 0  ;;  %v228_v25 = vsub.s32 0, %v777_v13  ;;  %v302_v26 = vsel %vm298_vm14, %v282_v32, %v285_v61  ;;  %v311_v28 = vsel %vm301_vm1, %v297_v8, 1326507024 }
  0x4e   :  { %v129_v12 = vsel %vm500_vm2, 0, %v499_v5  ;;  %v304_v33 = vsel %vm300_vm0, %v288_v62, %v303_v16  ;;  %v312_v34 = vsel %vm300_vm0, %v294_v3, %v311_v28  ;;  %v309_v35 = vsel %vm299_vm3, %v306_v11, %v308_v39 }
  0x4f   :  { %v130_v22 = vsub.s32 32, %v129_v12  ;;  %v131_v23 = vshll.u32 %v741_v27, %v129_v12  ;;  %v134_v45 = vsub.s32 4294967266, %v129_v12  ;;  %v502_v27 = vmin.u32 %v228_v25, %v777_v13 }
  0x50   :  { %v313_v36 = vsel %vm299_vm3, %v310_v6, %v312_v34  ;;  %vm381_vm4 = vcmp.gt.s32.totalorder %v380_v18, 0  ;;  %v147_v41 = vsel %vm768_vm15, 0, %v145_v24  ;;  %v305_v48 = vsel %vm299_vm3, %v302_v26, %v304_v33 }
  0x51   :  { %v132_v29 = vshrl.u32 %v114_v59, %v130_v22  ;;  %v135_v30 = vadd.s32 127, %v134_v45  ;;  %v795_v37 = vmul.u32.u64.low %v756_v50, %v313_v36  ;;  %v796_v40 = vmul.u32.u64.high %v756_v50, %v313_v36, %v795_v37 }
  0x52   :  { %v230_v46 = vclz %v502_v27  ;;  %v377_v42 = vand.u32 8388607, %v370_v52  ;;  %v804_v57 = vmul.u32.u64.low %v756_v50, %v309_v35  ;;  %v805_v58 = vmul.u32.u64.high %v756_v50, %v309_v35, %v804_v57 }
  0x53   :  { %v133_v9 = vor.u32 %v132_v29, %v131_v23  ;;  %v136_v43 = vshll.u32 %v135_v30, 23  ;;  %v382_v60 = vsel %vm381_vm4, %v380_v18, 0  ;;  %v151_v62 = vadd.s32 3, %v147_v41 }
  0x54   :  { %v503_v59 = vadd.s32 4294967294, %v230_v46  ;;  %v218_v1 = vadd.s32 %v725_v14, %v733_v20  ;;  %v321_v38 = vmul.u32 %v756_v50, %v305_v48  ;;  %vm323_vm6 = vc.u32 %v796_v40, %v804_v57 }
  0x55   :  { %v137_v54 = vor.u32 4788187, %v136_v43  ;;  %v140_v56 = vcvt.s32.f32 %v133_v9  ;;  %v384_v3 = vand.u32 31, %v382_v60  ;;  %vm164_vm7 = vcmp.lt.s32.totalorder %v641_v17, 0 }
  0x56   :  { %vm504_vm5 = vcmp.lt.s32.totalorder %v503_v59, 0  ;;  %v324_v31 = vadd.s32 1, %v805_v58  ;;  %v378_v32 = vor.u32 8388608, %v377_v42  ;;  %v816_v20 = vand.u32 3, %v151_v62 }
  0x57   :  { %v138_v61 = vand.u32 2147483647, %v137_v54  ;;  %v233_v7 = vsel %vm504_vm5, 0, %v503_v59  ;;  %v385_v18 = vsub.s32 32, %v384_v3  ;;  %v248_v50 = vsub.s32 4, %v764_v0 }
  0x58   :  { %v234_v8 = vsub.s32 32, %v233_v7  ;;  %v235_v10 = vshll.u32 %v777_v13, %v233_v7  ;;  %v238_v11 = vsub.s32 4294967266, %v233_v7  ;;  %v325_v12 = vsel %vm323_vm6, %v324_v31, %v805_v58 }
  0x59   :  { %v141_v5 = vmul.f32 %v140_v56, %v138_v61  ;;  %v326_v22 = vadd.s32 %v325_v12, %v321_v38  ;;  %v820_v23 = vshrl.u32 %v382_v60, 5  ;;  %vm826_vm8 = vcmp.le.f32.partialorder %v162_v21, 0.7853982 }
  0x5a   :  { %v236_v16 = vshrl.u32 %v218_v1, %v234_v8  ;;  %v239_v39 = vadd.s32 127, %v238_v11  ;;  %v387_v6 = vshll.u32 %v604_v47, %v384_v3  ;;  %v388_v24 = vshrl.u32 %v605_v49, %v385_v18 }
  0x5b   :  { %v142_v14 = vxor.u32 2147483648, %v141_v5  ;;  %v390_v25 = vshll.u32 %v605_v49, %v384_v3  ;;  %v327_v30 = vadd.s32 536870912, %v326_v22  ;;  %v391_v33 = vshrl.u32 %v606_v51, %v385_v18 }
  0x5c   :  { %v237_v28 = vor.u32 %v236_v16, %v235_v10  ;;  %v240_v29 = vshll.u32 %v239_v39, 23  ;;  %v393_v21 = vshll.u32 %v606_v51, %v384_v3  ;;  %v394_v34 = vshrl.u32 %v607_v53, %v385_v18 }
  0x5d   :  { %v143_v45 = vsel %vm60_vm13, %v142_v14, %v141_v5  ;;  %v839_v36 = vshrl.u32 %v327_v30, 30  ;;  %v396_v49 = vshll.u32 %v607_v53, %v384_v3  ;;  %v397_v4 = vshrl.u32 %v608_v55, %v385_v18 }
  0x5e   :  { %v146_v26 = vsel %vm768_vm15, %v638_v15, %v143_v45  ;;  %v241_v27 = vor.u32 4788187, %v240_v29  ;;  %v244_v35 = vcvt.s32.f32 %v237_v28  ;;  %v399_v9 = vshll.u32 %v608_v55, %v384_v3 }
  0x5f   :  { %539 = vcosq.f32 %v146_v26  ;;  %v844_v43 = vshll.u32 %v378_v32, 8  ;;  %vm154_vm9 = vcmp.eq.s32.totalorder %v816_v20, 0  ;;  %v249_v51 = vsel %vm164_vm7, %v248_v50, %v764_v0 }
  0x60   :  { %541 = vsinq.f32 %v146_v26  ;;  %v242_v37 = vand.u32 2147483647, %v241_v27  ;;  %v329_v41 = vshll.u32 %v839_v36, 30  ;;  %v400_v46 = vshrl.u32 %v609_v63, %v385_v18 }
  0x61   :  { %vm153_vm10 = vcmp.lt.s32.totalorder %v816_v20, 2  ;;  %v389_v53 = vor.u32 %v388_v24, %v387_v6  ;;  %v392_v48 = vor.u32 %v391_v33, %v390_v25  ;;  %v395_v42 = vor.u32 %v394_v34, %v393_v21 }
  0x62   :  { %v398_v54 = vor.u32 %v397_v4, %v396_v49  ;;  %v245_v55 = vmul.f32 %v244_v35, %v242_v37  ;;  %v330_v56 = vsub.s32 %v326_v22, %v329_v41  ;;  %v401_v58 = vor.u32 %v400_v46, %v399_v9 }
  0x63   :  { %vm405_vm11 = vcmp.lt.s32.totalorder %v820_v23, 4  ;;  %vm157_vm12 = vcmp.eq.s32.totalorder %v816_v20, 2  ;;  %v386_v59 = vshrl.u32 %v604_v47, %v385_v18  ;;  %vm402_vm13 = vcmp.lt.s32.totalorder %v820_v23, 1 }
  0x64   :  { %vm404_vm14 = vcmp.lt.s32.totalorder %v820_v23, 3  ;;  %v246_v63 = vxor.u32 2147483648, %v245_v55  ;;  %v251_v0 = vsel %vm826_vm8, 0, %v249_v51  ;;  %v332_v60 = vsub.s32 0, %v330_v56 }
  0x65   :  { %vm403_vm15 = vcmp.lt.s32.totalorder %v820_v23, 2  ;;  %vm150_vm0 = vweird.f32 %v638_v15  ;;  %v407_v61 = vsel %vm405_vm11, %v395_v42, 2102212464  ;;  %v411_v62 = vsel %vm405_vm11, %v398_v54, 920167782 }
  0x66   :  { %v415_v1 = vsel %vm405_vm11, %v401_v58, 1326507024  ;;  %v247_v38 = vsel %vm164_vm7, %v246_v63, %v245_v55  ;;  %v506_v47 = vmin.u32 %v332_v60, %v330_v56  ;;  %v410_v3 = vsel %vm402_vm13, %v389_v53, %v392_v48 }
  0x67   :  { %v412_v5 = vsel %vm404_vm14, %v395_v42, %v411_v62  ;;  %v250_v31 = vsel %vm826_vm8, %v641_v17, %v247_v38  ;;  %v406_v32 = vsel %vm402_vm13, %v386_v59, %v389_v53  ;;  %v414_v8 = vsel %vm402_vm13, %v392_v48, %v395_v42 }
  0x68   :  { %v416_v10 = vsel %vm404_vm14, %v398_v54, %v415_v1  ;;  %543 = vcosq.f32 %v250_v31  ;;  %v334_v14 = vclz %v506_v47  ;;  %v408_v50 = vsel %vm404_vm14, %v392_v48, %v407_v61 }
  0x69   :  { %v540_v7 = vpop.eup %539  ;;  %545 = vsinq.f32 %v250_v31  ;;  %v255_v16 = vadd.s32 3, %v251_v0  ;;  %v413_v39 = vsel %vm403_vm15, %v410_v3, %v412_v5  ;;  %v322_v45 = vadd.s32 %v804_v57, %v796_v40 }
  0x6a   :  { %v542_v11 = vpop.eup %541  ;;  %v158_v18 = vxor.u32 2147483648, %v540_v7  ;;  %v507_v13 = vadd.s32 4294967294, %v334_v14  ;;  %v417_v6 = vsel %vm403_vm15, %v414_v8, %v416_v10  ;;  %v409_v25 = vsel %vm403_vm15, %v406_v32, %v408_v50 }
  0x6b   :  { %v155_v12 = vxor.u32 2147483648, %v542_v11  ;;  %v892_v26 = vmul.u32.u64.low %v844_v43, %v417_v6  ;;  %v893_v28 = vmul.u32.u64.high %v844_v43, %v417_v6, %v892_v26  ;;  %v256_v21 = vand.u32 3, %v255_v16 }
  0x6c   :  { %v159_v22 = vsel %vm157_vm12, %v158_v18, %v542_v11  ;;  %vm508_vm1 = vcmp.lt.s32.totalorder %v507_v13, 0  ;;  %v898_v40 = vmul.u32.u64.low %v844_v43, %v413_v39  ;;  %v899_v57 = vmul.u32.u64.high %v844_v43, %v413_v39, %v898_v40 }
  0x6d   :  { %v156_v24 = vsel %vm154_vm9, %v540_v7, %v155_v12  ;;  %v337_v33 = vsel %vm508_vm1, 0, %v507_v13  ;;  %v425_v35 = vmul.u32 %v844_v43, %v409_v25  ;;  %vm261_vm3 = vcmp.eq.s32.totalorder %v256_v21, 2 }
  0x6e   :  { %v160_v29 = vsel %vm153_vm10, %v156_v24, %v159_v22  ;;  %v338_v34 = vsub.s32 32, %v337_v33  ;;  %v339_v23 = vshll.u32 %v330_v56, %v337_v33  ;;  %v342_v27 = vsub.s32 4294967266, %v337_v33 }
  0x6f   :  { %v161_v30 = vsel %vm150_vm0, nan, %v160_v29  ;;  %vm427_vm2 = vc.u32 %v893_v28, %v898_v40  ;;  %v428_v4 = vadd.s32 1, %v899_v57  ;;  %vm258_vm4 = vcmp.eq.s32.totalorder %v256_v21, 0 }
  0x70   :  { %474 = vst [vmem:[#allocation5] sm:$0xff] %v161_v30  ;;  %v340_v20 = vshrl.u32 %v322_v45, %v338_v34  ;;  %v343_v49 = vadd.s32 127, %v342_v27  ;;  %vm257_vm5 = vcmp.lt.s32.totalorder %v256_v21, 2  ;;  %vm254_vm6 = vweird.f32 %v641_v17 }
  0x71   :  { %v429_v15 = vsel %vm427_vm2, %v428_v4, %v899_v57  ;;  %v352_v59 = vsub.s32 4, %v839_v36  ;;  %vm268_vm7 = vcmp.lt.s32.totalorder %v645_v19, 0  ;;  %vm267_vm8 = vcmp.le.f32.partialorder %v266_v44, 0.7853982 }
  0x72   :  { %v544_v9 = vpop.eup %543  ;;  %v341_v37 = vor.u32 %v340_v20, %v339_v23  ;;  %v344_v51 = vshll.u32 %v343_v49, 23  ;;  %v430_v53 = vadd.s32 %v429_v15, %v425_v35  ;;  %v426_v18 = vadd.s32 %v898_v40, %v893_v28 }
  0x73   :  { %v546_v41 = vpop.eup %545  ;;  %v262_v46 = vxor.u32 2147483648, %v544_v9  ;;  %v353_v17 = vsel %vm268_vm7, %v352_v59, %v839_v36  ;;  %vm358_vm13 = vweird.f32 %v645_v19  ;;  %vm372_vm14 = vcmp.lt.s32.totalorder %v716_v2, 0 }
  0x74   :  { %v259_v48 = vxor.u32 2147483648, %v546_v41  ;;  %v345_v42 = vor.u32 4788187, %v344_v51  ;;  %v348_v43 = vcvt.s32.f32 %v341_v37  ;;  %v431_v55 = vadd.s32 536870912, %v430_v53 }
  0x75   :  { %v263_v54 = vsel %vm261_vm3, %v262_v46, %v546_v41  ;;  %v355_v5 = vsel %vm267_vm8, 0, %v353_v17  ;;  %vm371_vm15 = vcmp.le.f32.partialorder %v370_v52, 0.7853982  ;;  %vm462_vm3 = vweird.f32 %v716_v2 }
  0x76   :  { %v260_v56 = vsel %vm258_vm4, %v544_v9, %v259_v48  ;;  %v346_v58 = vand.u32 2147483647, %v345_v42  ;;  %v432_v0 = vshrl.u32 %v431_v55, 30  ;;  %v359_v32 = vadd.s32 3, %v355_v5 }
  0x77   :  { %v264_v63 = vsel %vm257_vm5, %v260_v56, %v263_v54 }
  0x78   :  { %v265_v60 = vsel %vm254_vm6, nan, %v264_v63  ;;  %v349_v61 = vmul.f32 %v348_v43, %v346_v58  ;;  %v433_v62 = vshll.u32 %v432_v0, 30  ;;  %v360_v11 = vand.u32 3, %v359_v32 }
  0x79   :  { %475 = vst [vmem:[#allocation5 + $0x8] sm:$0xff] %v265_v60  ;;  %v456_v33 = vsub.s32 4, %v432_v0 }
  0x7a   :  { %v350_v1 = vxor.u32 2147483648, %v349_v61  ;;  %v434_v38 = vsub.s32 %v430_v53, %v433_v62  ;;  %vm365_vm10 = vcmp.eq.s32.totalorder %v360_v11, 2  ;;  %vm362_vm11 = vcmp.eq.s32.totalorder %v360_v11, 0 }
  0x7b   :  { %vm361_vm12 = vcmp.lt.s32.totalorder %v360_v11, 2  ;;  %v457_v23 = vsel %vm372_vm14, %v456_v33, %v432_v0 }
  0x7c   :  { %v351_v47 = vsel %vm268_vm7, %v350_v1, %v349_v61  ;;  %v436_v7 = vsub.s32 0, %v434_v38  ;;  %v459_v35 = vsel %vm371_vm15, 0, %v457_v23 }
  0x7d   :  { %v354_v3 = vsel %vm267_vm8, %v645_v19, %v351_v47  ;;  %v463_v20 = vadd.s32 3, %v459_v35 }
  0x7e   :  { %547 = vcosq.f32 %v354_v3  ;;  %v510_v31 = vmin.u32 %v436_v7, %v434_v38 }
  0x7f   :  { %549 = vsinq.f32 %v354_v3  ;;  %v464_v49 = vand.u32 3, %v463_v20 }
  0x80   :  { %v438_v8 = vclz %v510_v31 }
  0x81   :  { %vm469_vm0 = vcmp.eq.s32.totalorder %v464_v49, 2  ;;  %vm466_vm1 = vcmp.eq.s32.totalorder %v464_v49, 0  ;;  %vm465_vm2 = vcmp.lt.s32.totalorder %v464_v49, 2 }
  0x82   :  { %v511_v10 = vadd.s32 4294967294, %v438_v8 }
  0x84   :  { %vm512_vm9 = vcmp.lt.s32.totalorder %v511_v10, 0 }
  0x85   :  { %v441_v44 = vsel %vm512_vm9, 0, %v511_v10 }
  0x86   :  { %v442_v14 = vsub.s32 32, %v441_v44  ;;  %v443_v50 = vshll.u32 %v434_v38, %v441_v44  ;;  %v446_v36 = vsub.s32 4294967266, %v441_v44 }
  0x88   :  { %v548_v12 = vpop.eup %547  ;;  %v444_v22 = vshrl.u32 %v426_v18, %v442_v14  ;;  %v447_v45 = vadd.s32 127, %v446_v36 }
  0x89   :  { %v550_v16 = vpop.eup %549  ;;  %v366_v39 = vxor.u32 2147483648, %v548_v12 }
  0x8a   :  { %v363_v13 = vxor.u32 2147483648, %v550_v16  ;;  %v445_v24 = vor.u32 %v444_v22, %v443_v50  ;;  %v448_v25 = vshll.u32 %v447_v45, 23 }
  0x8b   :  { %v367_v6 = vsel %vm365_vm10, %v366_v39, %v550_v16 }
  0x8c   :  { %v364_v26 = vsel %vm362_vm11, %v548_v12, %v363_v13  ;;  %v449_v29 = vor.u32 4788187, %v448_v25  ;;  %v452_v40 = vcvt.s32.f32 %v445_v24 }
  0x8d   :  { %v368_v28 = vsel %vm361_vm12, %v364_v26, %v367_v6 }
  0x8e   :  { %v369_v57 = vsel %vm358_vm13, nan, %v368_v28  ;;  %v450_v30 = vand.u32 2147483647, %v449_v29 }
  0x8f   :  { %476 = vst [vmem:[#allocation5 + $0x10] sm:$0xff] %v369_v57 }
  0x90   :  { %v453_v21 = vmul.f32 %v452_v40, %v450_v30 }
  0x92   :  { %v454_v34 = vxor.u32 2147483648, %v453_v21 }
  0x94   :  { %v455_v19 = vsel %vm372_vm14, %v454_v34, %v453_v21 }
  0x95   :  { %v458_v27 = vsel %vm371_vm15, %v716_v2, %v455_v19 }
  0x96   :  { %551 = vcosq.f32 %v458_v27 }
  0x97   :  { %553 = vsinq.f32 %v458_v27 }
  0xa0   :  { %v552_v4 = vpop.eup %551 }
  0xa1   :  { %v554_v9 = vpop.eup %553  ;;  %v470_v37 = vxor.u32 2147483648, %v552_v4 }
  0xa2   :  { %v467_v51 = vxor.u32 2147483648, %v554_v9 }
  0xa3   :  { %v471_v52 = vsel %vm469_vm0, %v470_v37, %v554_v9 }
  0xa4   :  { %v468_v15 = vsel %vm466_vm1, %v552_v4, %v467_v51 }
  0xa5   :  { %v472_v41 = vsel %vm465_vm2, %v468_v15, %v471_v52 }
  0xa6   :  { %v473_v46 = vsel %vm462_vm3, nan, %v472_v41 }
  0xa7   :  { %477 = vst [vmem:[#allocation5 + $0x18] sm:$0xff] %v473_v46 }
  0xa8   :  { %588 = shalt.err (!%p585_p12)
}
  0xa9   :  { %s589_s22 = scalar_lea.hbm %s934_s1, 512 }
  0xaa   :  { %p590_p13 = scmp.ne.s32.totalorder %s934_s1, %s589_s22  ;;  %p593_p0 = scmp.lt.u32.totalorder %s589_s22, %s934_s1 }
  0xac   :  { %p595_p1 = pnand %p593_p0, %p590_p13 }
  0xae   :  { %598 = shalt.err (!%p595_p1)
}
  0xaf   :  { %s611_s27 = smov 128   ;;  %s612_s28 = smov 8  }
  0xb0   :  { %489 = dma.vmem_to_hbm [thread:$0]  %s484_s18, 512, %s934_s1, [#allocation4], %s611_s27, %s611_s27, %s612_s28  }
  0xb1   :  { %601 = dma.done.wait [#allocation4], 512  }
  0xb2   :  { %602 = vsyncadd [#allocation4], 4294966784 }
  0xb3   :  { %493 = vsyncpa [#allocation3], 1 }
  0xb4   :  { %494 = vsyncpa [#allocation4], 1 }

</bundles_post_ra>
